<compile_context>
chip_gen: v5e
topology: v5e:2x2
jax: 0.10.0
libtpu: 0.0.40
codegen_flags: <defaults>
</compile_context>

<pallas_src>
import jax
import jax.numpy as jnp
from jax.experimental import pallas as pl
from jax.experimental.pallas import tpu as pltpu


def _round_up(v, m):
    return (v + m - 1) // m * m


def _eqlr_matmul_kernel(w_ref, p_ref, b_ref, o_ref):
    # (OC_pad, K_pad) @ (K_pad, TM) -> (OC_pad, TM); contracting the RHS on its
    # sublane axis keeps the batched M axis lane-dense and needs no pre-MXU
    # relayout. Bias is f32 and adds one VPU op per output vreg.
    o_ref[...] = jax.lax.dot_general(
        w_ref[...], p_ref[...],
        dimension_numbers=(((1,), (0,)), ((), ())),
        preferred_element_type=jnp.float32) + b_ref[...]


def equalized_lr_conv2d(x, weight, bias, *, stride=1, padding=0,
                        dot_dtype=jnp.bfloat16, max_tile_m=2048):
    """Pallas forward of EqualizedLR_Conv2d.

    x:      (N, H, W) float32   (forward unsqueezes to NCHW with C = 1)
    weight: (out_ch, in_ch=1, kh, kw) float32
    bias:   (out_ch,) float32
    returns (N, out_ch, H_out) float32  (trailing W_out == 1 dim squeezed)
    """
    n = x.shape[0]
    out_ch, in_ch, kh, kw = weight.shape
    assert in_ch == 1, "forward unsqueezes x to a single input channel"
    scale = (2.0 / (in_ch * kh * kw)) ** 0.5

    x = x.astype(jnp.float32)
    if padding:
        x = jnp.pad(x, ((0, 0), (padding, padding), (padding, padding)))
    h_p, w_p = x.shape[1], x.shape[2]
    h_out = (h_p - kh) // stride + 1
    w_out = (w_p - kw) // stride + 1
    # TODO(synk): only the module's intended W_out == 1 case (kernel width
    # covering the padded feature axis, so .squeeze(-1) removes it) is handled.
    assert w_out == 1, "kernel width must cover the padded feature axis"

    k = kh * kw                      # contraction length
    m = n * h_out                    # batched lane axis (all batches at once)

    # ---- im2col built directly in (kh, kw, N, H_out) layout:
    #      patches[i*kw + j, n*H_out + h] = x[n, h*stride + i, j]
    # The only slow-axis shuffle is the (N,H,W)->(W,N,H) transpose of x itself;
    # the kh strided windows then land in the target layout and XLA fuses the
    # stack as a concat of strided slices (no transpose of the big patch array).
    span = (h_out - 1) * stride + 1
    xt = jnp.transpose(x, (2, 0, 1))[:kw]                       # (kw, N, H_p)
    patches = jnp.stack(
        [xt[:, :, i:i + span:stride] for i in range(kh)], axis=0)  # (kh,kw,N,H_out)
    patches = patches.reshape(k, m).astype(dot_dtype)

    # ---- sublane alignment (unmasked loads for any kernel size / dtype)
    sub_align = 16 if jnp.dtype(dot_dtype).itemsize == 2 else 8
    k_pad = _round_up(k, sub_align)
    oc_pad = _round_up(out_ch, sub_align)

    # ---- coarse lane tiling: one step when M fits in a single tile, otherwise
    # an even number of max_tile_m-lane steps (v7x 2-TC balance; pad lanes are
    # zeros, so any extra compute is free).
    m128 = _round_up(m, 128)
    if m128 <= max_tile_m:
        tile_m, steps = m128, 1
    else:
        tile_m = max_tile_m
        steps = (m + tile_m - 1) // tile_m
        if steps % 2:
            steps += 1                                # even grid for v7x megacore
    m_pad = tile_m * steps

    patches = jnp.pad(patches, ((0, k_pad - k), (0, m_pad - m)))

    # Fold the equalized-LR scale into the weight in f32, then cast.
    w_flat = jnp.zeros((oc_pad, k_pad), jnp.float32).at[:out_ch, :k].set(
        weight.reshape(out_ch, k).astype(jnp.float32) * scale).astype(dot_dtype)
    b2d = jnp.zeros((oc_pad, 1), jnp.float32).at[:out_ch, 0].set(
        bias.astype(jnp.float32))

    out_pad = pl.pallas_call(
        _eqlr_matmul_kernel,
        out_shape=jax.ShapeDtypeStruct((oc_pad, m_pad), jnp.float32),
        grid=(steps,),
        in_specs=[
            pl.BlockSpec((oc_pad, k_pad), lambda i: (0, 0)),   # resident weight
            pl.BlockSpec((k_pad, tile_m), lambda i: (0, i)),   # streaming patches
            pl.BlockSpec((oc_pad, 1), lambda i: (0, 0)),       # resident f32 bias
        ],
        out_specs=pl.BlockSpec((oc_pad, tile_m), lambda i: (0, i)),
        compiler_params=pltpu.CompilerParams(
            dimension_semantics=("parallel",)),                # shard M tiles on v7x TCs
    )(w_flat, patches, b2d)

    out = out_pad[:out_ch, :m].reshape(out_ch, n, h_out)       # M splits as (n, h)
    # PyTorch semantics want (N, out_ch, H_out); this is a small output-sized
    # copy outside the kernel (return (out_ch, N, H_out) directly if a consumer
    # can accept it to avoid even that).
    return out.transpose(1, 0, 2)


def _reference(x, weight, bias, stride, padding):
    """Pure-JAX f32 reference of the PyTorch forward."""
    out_ch, in_ch, kh, kw = weight.shape
    scale = (2.0 / (in_ch * kh * kw)) ** 0.5
    x4 = x[:, None, :, :].astype(jnp.float32)                  # unsqueeze(1) -> NCHW
    ref = jax.lax.conv_general_dilated(
        x4, weight.astype(jnp.float32) * scale,
        window_strides=(stride, stride),
        padding=[(padding, padding), (padding, padding)],
        dimension_numbers=("NCHW", "OIHW", "NCHW"))
    return (ref + bias[None, :, None, None]).squeeze(-1)       # (N, out_ch, H_out)


if __name__ == "__main__":
    key = jax.random.PRNGKey(0)

    # (N, H, W, out_ch, kh, kw, stride, padding, rand_bias, dot_dtype, max_tile_m, tol)
    configs = [
        # tiny: M=28 -> one 128-lane step, f32, tight tolerance
        (2, 16, 8, 4, 3, 8, 1, 0, False, jnp.float32, 2048, 1e-4),
        # M=280 with max_tile_m=256 -> 2 even 256-lane steps (multi-step grid path)
        (20, 16, 8, 4, 3, 8, 1, 0, True, jnp.float32, 256, 1e-4),
        # stride=2, padding=1, kw=10 (K=30 -> padded to 32), f32
        (6, 16, 8, 4, 3, 10, 2, 1, True, jnp.float32, 2048, 1e-4),
        # bf16 patches/weight (MXU-native, f32 accumulate) -> looser tolerance
        (20, 16, 8, 4, 3, 8, 1, 0, True, jnp.bfloat16, 2048, 5e-2),
    ]
    for (N, H, W, out_ch, kh, kw, stride, padding,
         rand_bias, dot_dtype, max_tile_m, tol) in configs:
        key, kx, kw_, kb = jax.random.split(key, 4)
        in_ch = 1

        x = jax.random.normal(kx, (N, H, W), dtype=jnp.float32)
        # nn.init.normal_(weight); bias is zero-init in the module, but we also
        # exercise a nonzero (trained) bias in some configs.
        weight = jax.random.normal(kw_, (out_ch, in_ch, kh, kw), dtype=jnp.float32)
        bias = (jax.random.normal(kb, (out_ch,), dtype=jnp.float32)
                if rand_bias else jnp.zeros((out_ch,), jnp.float32))

        out = equalized_lr_conv2d(x, weight, bias, stride=stride, padding=padding,
                                  dot_dtype=dot_dtype, max_tile_m=max_tile_m)
        out = jax.block_until_ready(out)

        ref = _reference(x, weight, bias, stride, padding)
        h_out = (H + 2 * padding - kh) // stride + 1
        assert out.shape == ref.shape == (N, out_ch, h_out), (out.shape, ref.shape)
        assert jnp.allclose(out, ref, atol=tol, rtol=tol), (
            f"mismatch: max abs err {jnp.max(jnp.abs(out - ref))}")

    print("KERNEL_OK")
</pallas_src>

<mosaic_0001>
module attributes {stable_mosaic.version = 11 : i64} {
  func.func @_eqlr_matmul_kernel(%arg0: i32, %arg1: memref<8x24xf32, #tpu.memory_space<vmem>>, %arg2: memref<24x128xf32, #tpu.memory_space<vmem>>, %arg3: memref<8x1xf32, #tpu.memory_space<vmem>>, %arg4: memref<8x128xf32, #tpu.memory_space<vmem>>) attributes {dimension_semantics = [#tpu.dimension_semantics<parallel>], iteration_bounds = array<i64: 1>, scalar_prefetch = 0 : i64, scratch_operands = 0 : i64, tpu.core_type = #tpu.core_type<tc>, window_params = [{pipeline_mode = #tpu.pipeline_mode<synchronous>, transform_indices = @transform_0, window_bounds = array<i64: 8, 24>}, {transform_indices = @transform_1, window_bounds = array<i64: 24, 128>}, {pipeline_mode = #tpu.pipeline_mode<synchronous>, transform_indices = @transform_2, window_bounds = array<i64: 8, 1>}, {transform_indices = @transform_3, window_bounds = array<i64: 8, 128>}]} {
    %c0 = arith.constant 0 : index
    %c0_0 = arith.constant 0 : index
    %0 = vector.load %arg1[%c0, %c0_0] : memref<8x24xf32, #tpu.memory_space<vmem>>, vector<8x24xf32>
    %c0_1 = arith.constant 0 : index
    %c0_2 = arith.constant 0 : index
    %1 = vector.load %arg2[%c0_1, %c0_2] : memref<24x128xf32, #tpu.memory_space<vmem>>, vector<24x128xf32>
    %cst = arith.constant dense<0.000000e+00> : vector<8x128xf32>
    %2 = tpu.matmul %0, %1, %cst {dimension_numbers = #tpu.dot_dimension_numbers<[1], [0], [0], [1], [0, 0, 1, 1], [], []>} : vector<8x24xf32>, vector<24x128xf32>, vector<8x128xf32> -> vector<8x128xf32>
    %c0_3 = arith.constant 0 : index
    %c0_4 = arith.constant 0 : index
    %3 = vector.load %arg3[%c0_3, %c0_4] : memref<8x1xf32, #tpu.memory_space<vmem>>, vector<8x1xf32>
    %4 = vector.broadcast %3 : vector<8x1xf32> to vector<8x128xf32>
    %5 = arith.addf %2, %4 : vector<8x128xf32>
    %c0_5 = arith.constant 0 : index
    %c0_6 = arith.constant 0 : index
    %6 = vector.load %arg4[%c0_5, %c0_6] : memref<8x128xf32, #tpu.memory_space<vmem>>, vector<8x128xf32>
    tpu.vector_store %arg4[%c0_5, %c0_6], %5 {strides = array<i32>} : memref<8x128xf32, #tpu.memory_space<vmem>>, vector<8x128xf32>,
    return
  }
  func.func @transform_0(%arg0: i32) -> (i32, i32) {
    %c0_i32 = arith.constant 0 : i32
    %c0_i32_0 = arith.constant 0 : i32
    %c0_i32_1 = arith.constant 0 : i32
    return %c0_i32, %c0_i32_0 : i32, i32
  }
  func.func @transform_1(%arg0: i32) -> (i32, i32) {
    %c0_i32 = arith.constant 0 : i32
    %c0_i32_0 = arith.constant 0 : i32
    return %c0_i32, %arg0 : i32, i32
  }
  func.func @transform_2(%arg0: i32) -> (i32, i32) {
    %c0_i32 = arith.constant 0 : i32
    %c0_i32_0 = arith.constant 0 : i32
    %c0_i32_1 = arith.constant 0 : i32
    return %c0_i32, %c0_i32_0 : i32, i32
  }
  func.func @transform_3(%arg0: i32) -> (i32, i32) {
    %c0_i32 = arith.constant 0 : i32
    %c0_i32_0 = arith.constant 0 : i32
    return %c0_i32, %arg0 : i32, i32
  }
}

</mosaic_0001>

<bundles_post_ra>
// kernel: tpu_custom_call.1
= control target key start
LH: loop header
LB: loop body
LE: loop exit
PB: predicated region body
PF: predicated region fallthrough
CT: control target
= control target key end

     0   :  { %8 = vsyncpa [#allocation3], 0  ;;  %s179_s0 = inlined_call_operand.vmem [shape: f32[8,24], index: 0, kind: input, shape index: {}]   ;;  %s180_s1 = inlined_call_operand.hbm [shape: f32[24,128], index: 1, kind: input, shape index: {}]   ;;  %s181_s2 = inlined_call_operand.vmem [shape: f32[8,1], index: 2, kind: input, shape index: {}]   ;;  %s182_s3 = inlined_call_operand.hbm [shape: f32[8,128], index: 3, kind: output, shape index: {}]  }
   0x1   :  { %9 = vsyncpa [#allocation4], 0  ;;  %s16_s14 = sshll.u32 %s180_s1, 4  ;;  %s142_s15 = smov [#allocation2]   ;;  %s17_s14 = int_to_ptr.hbm [resolvable:$true] %s16_s14 }
   0x2   :  { %s18_s16 = sshll.u32 %s142_s15, 4  ;;  %s143_s17 = smov 128   ;;  %s19_s16 = int_to_ptr.vmem [resolvable:$true] %s18_s16 }
   0x3   :  { %s144_s18 = smov 8  }
   0x4   :  { %24 = dma.hbm_to_vmem [thread:$0]  %s17_s14, 384, %s19_s16, [#allocation3], %s143_s17, %s143_s17, %s144_s18  }
   0x5   :  { %138 = dma.done.wait [#allocation3], 384  }
   0x6   :  { %139 = vsyncadd [#allocation3], 4294966912  ;;  %v145_v0 = vmov 0   ;;  %v34_v1 = vld [vmem:[#allocation2 + $0x10] sm:$0xff]  ;;  %v33_v2 = vld [vmem:[#allocation2 + $0x8] sm:$0xff]  ;;  %vm41_vm0 = vcmask 195584  }
   0x7   :  { %89 = vset.pattern.permute.xlu0 %v145_v0  ;;  %58 = vmatpush.msra.mxu0 %v34_v1  ;;  %v35_v3 = vld [vmem:[%s181_s2] sm:$0xff]  ;;  %s146_s22 = smov [#allocation5]   ;;  %s73_s26 = sshll.u32 %s182_s3, 4  ;;  %s74_s26 = int_to_ptr.hbm [resolvable:$true] %s73_s26 }
   0x8   :  { %v32_v4 = vld [vmem:[#allocation2] sm:$0xff]  ;;  %38 = vperm.xlu0 %89, %v35_v3   ;;  %s71_s23 = sshll.u32 %s146_s22, 4  ;;  %s72_s23 = int_to_ptr.vmem [resolvable:$true] %s71_s23 }
   0x9   :  { %59 = vmatpush.msra.mxu0 %v33_v2  ;;  %v31_v5 = vld [vmem:[%s179_s0] sm:$0xff] }
   0xb   :  { %60 = vmatpush.msra.mxu0 %v32_v4 }
   0xc   :  { %83 = vmatmul.msk.f32.vlgmr.msra.gmra.mxu0 %vm41_vm0, %v31_v5 }
  0x7a   :  { %v39_v6 = vpop.permute.xlu0 %38 }
  0x89   :  { %v62_v7 = vpop.f32.mrf.mxu0 }
  0x8a   :  { %v63_v8 = vadd.f32 %v62_v7, %v39_v6 }
  0x8c   :  { %65 = vst [vmem:[#allocation5] sm:$0xff] %v63_v8 }
  0x8d   :  { %76 = dma.vmem_to_hbm [thread:$0]  %s72_s23, 128, %s74_s26, [#allocation4]  }
  0x8e   :  { %140 = dma.done.wait [#allocation4], 128  }
  0x8f   :  { %141 = vsyncadd [#allocation4], 4294967168 }
  0x90   :  { %81 = vsyncpa [#allocation3], 1 }
  0x91   :  { %82 = vsyncpa [#allocation4], 1 }

</bundles_post_ra>
